<compile_context>
chip_gen: v7x
topology: tpu7x:2x2x1
jax: 0.10.0
libtpu: 0.0.40
codegen_flags: <defaults>
</compile_context>

<pallas_src>
import math

import jax
import jax.numpy as jnp
from jax.experimental import pallas as pl
from jax.experimental.pallas import tpu as pltpu


def _build_embedding_table(n_steps: int, embed_dim: int) -> jnp.ndarray:
    """Deterministic sinusoidal table, identical to the PyTorch __init__."""
    positions = jnp.arange(n_steps, dtype=jnp.float32)[:, None]          # (n_steps, 1)
    div_term = jnp.exp(
        jnp.arange(0, embed_dim, 2, dtype=jnp.float32)
        * (-math.log(10000.0) / embed_dim)
    )                                                                     # (ceil(embed_dim/2),)
    sin_part = jnp.sin(positions * div_term)
    cos_part = jnp.cos(positions * div_term)
    table = jnp.zeros((n_steps, embed_dim), dtype=jnp.float32)
    table = table.at[:, 0::2].set(sin_part)
    # Handles odd embed_dim gracefully (PyTorch reference assumes even).
    table = table.at[:, 1::2].set(cos_part[:, : embed_dim // 2])
    return table


def _gather_kernel(ids_ref, table_ref, out_ref):
    """One grid step: gather all rows of this batch tile via a one-hot matmul.

    ids_ref:   (tb, 1) int32 in VMEM  -- timestep ids for this batch tile
    table_ref: (n_steps, embed_dim)   -- full embedding table, VMEM-resident
    out_ref:   (tb, embed_dim)        -- dense output block, written once
    """
    n_steps = table_ref.shape[0]
    tb = out_ref.shape[0]

    # Clamp ids so out-of-range timesteps can never select garbage rows.
    ids = jnp.clip(ids_ref[...], 0, n_steps - 1)                      # (tb, 1)

    # one_hot[b, k] = 1.0 iff k == ids[b]; exact 0/1 values, so the MXU matmul
    # reproduces table rows exactly (multiplication by 1.0 + sum of zeros).
    steps = jax.lax.broadcasted_iota(jnp.int32, (tb, n_steps), 1)     # (tb, n_steps)
    one_hot = (steps == ids).astype(table_ref.dtype)                  # (tb, n_steps)

    out_ref[...] = jnp.dot(
        one_hot, table_ref[...], preferred_element_type=jnp.float32
    ).astype(out_ref.dtype)


def time_embedding_lookup(time_steps: jnp.ndarray, table: jnp.ndarray) -> jnp.ndarray:
    """Pallas gather: returns table[time_steps], shape (B, embed_dim)."""
    batch = time_steps.shape[0]
    n_steps, embed_dim = table.shape

    # ids as a small 2D int32 VMEM operand (lane dim == full dim -> valid block).
    ids = time_steps.astype(jnp.int32).reshape(batch, 1)

    # One grid step for small batches; tile the batch only when it is large
    # (tile must keep the (8,128) block rule: multiple of 8 or the full extent).
    if batch <= 256:
        tb = batch
    else:
        tb = 256
    num_tiles = pl.cdiv(batch, tb)

    # VMEM budget sanity: table + double-buffered ids/out tiles. Conservative
    # check against v7x's 32 MiB scoped default (smallest across generations).
    footprint = (
        n_steps * embed_dim * 4
        + 2 * (tb * 1 * 4 + tb * embed_dim * 4)
    )
    # TODO(synk): if the table ever exceeds the scoped VMEM budget, tile the
    # embed_dim (lane) axis in >=512-lane chunks instead of asserting.
    assert footprint < 28 * 1024 * 1024, "embedding table too large for resident-VMEM design"

    return pl.pallas_call(
        _gather_kernel,
        out_shape=jax.ShapeDtypeStruct((batch, embed_dim), table.dtype),
        grid=(num_tiles,),
        in_specs=[
            pl.BlockSpec((tb, 1), lambda i: (i, 0)),                  # ids tile
            pl.BlockSpec((n_steps, embed_dim), lambda i: (0, 0)),     # full table, resident
        ],
        out_specs=pl.BlockSpec((tb, embed_dim), lambda i: (i, 0)),
        compiler_params=pltpu.CompilerParams(
            # Disjoint output tiles per grid step -> legal to shard across
            # v7x's 2 TensorCores; no effect (and no downside) on v5e/v6e.
            dimension_semantics=("parallel",),
        ),
    )(ids, table)


class TimeEmbedding:
    """JAX/Pallas port of the PyTorch TimeEmbedding module."""

    def __init__(self, n_steps: int, embed_dim: int):
        self.embeddings = _build_embedding_table(n_steps, embed_dim)

    def forward(self, time_steps: jnp.ndarray, device=None) -> jnp.ndarray:
        # `device` from the PyTorch API is irrelevant under JAX placement.
        del device
        return time_embedding_lookup(time_steps, self.embeddings)


if __name__ == "__main__":
    n_steps = 16
    embed_dim = 32
    batch = 8

    module = TimeEmbedding(n_steps, embed_dim)

    key = jax.random.PRNGKey(0)
    time_steps = jax.random.randint(key, (batch,), 0, n_steps, dtype=jnp.int32)

    out = module.forward(time_steps)
    out = jax.block_until_ready(out)

    # Reference check (plain JAX gather).
    ref = module.embeddings[time_steps]
    assert out.shape == (batch, embed_dim), out.shape
    assert out.dtype == jnp.float32, out.dtype
    assert jnp.allclose(out, ref, atol=1e-6, rtol=0.0), "mismatch vs reference gather"

    print("KERNEL_OK")
</pallas_src>

<mosaic_0001>
module attributes {stable_mosaic.version = 11 : i64} {
  func.func @_gather_kernel(%arg0: i32, %arg1: memref<8x1xi32, #tpu.memory_space<vmem>>, %arg2: memref<16x32xf32, #tpu.memory_space<vmem>>, %arg3: memref<8x32xf32, #tpu.memory_space<vmem>>) attributes {dimension_semantics = [#tpu.dimension_semantics<parallel>], iteration_bounds = array<i64: 1>, scalar_prefetch = 0 : i64, scratch_operands = 0 : i64, tpu.core_type = #tpu.core_type<tc>, window_params = [{transform_indices = @transform_0, window_bounds = array<i64: 8, 1>}, {pipeline_mode = #tpu.pipeline_mode<synchronous>, transform_indices = @transform_1, window_bounds = array<i64: 16, 32>}, {transform_indices = @transform_2, window_bounds = array<i64: 8, 32>}]} {
    %c0 = arith.constant 0 : index
    %c0_0 = arith.constant 0 : index
    %0 = vector.load %arg1[%c0, %c0_0] : memref<8x1xi32, #tpu.memory_space<vmem>>, vector<8x1xi32>
    %c0_i32 = arith.constant 0 : i32
    %c15_i32 = arith.constant 15 : i32
    %1 = vector.broadcast %c0_i32 : i32 to vector<8x1xi32>
    %2 = arith.maxsi %1, %0 : vector<8x1xi32>
    %3 = vector.broadcast %c15_i32 : i32 to vector<8x1xi32>
    %4 = arith.minsi %3, %2 : vector<8x1xi32>
    %5 = tpu.iota {dimensions = array<i32: 1>} : vector<8x16xi32>
    %6 = vector.broadcast %4 : vector<8x1xi32> to vector<8x16xi32>
    %7 = arith.cmpi eq, %5, %6 : vector<8x16xi32>
    %8 = arith.extui %7 : vector<8x16xi1> to vector<8x16xi32>
    %9 = arith.sitofp %8 : vector<8x16xi32> to vector<8x16xf32>
    %c0_1 = arith.constant 0 : index
    %c0_2 = arith.constant 0 : index
    %10 = vector.load %arg2[%c0_1, %c0_2] : memref<16x32xf32, #tpu.memory_space<vmem>>, vector<16x32xf32>
    %cst = arith.constant dense<0.000000e+00> : vector<8x32xf32>
    %11 = tpu.matmul %9, %10, %cst {dimension_numbers = #tpu.dot_dimension_numbers<[1], [0], [0], [1], [0, 0, 1, 1], [], []>} : vector<8x16xf32>, vector<16x32xf32>, vector<8x32xf32> -> vector<8x32xf32>
    %c0_3 = arith.constant 0 : index
    %c0_4 = arith.constant 0 : index
    %12 = vector.load %arg3[%c0_3, %c0_4] : memref<8x32xf32, #tpu.memory_space<vmem>>, vector<8x32xf32>
    tpu.vector_store %arg3[%c0_3, %c0_4], %11 {strides = array<i32>} : memref<8x32xf32, #tpu.memory_space<vmem>>, vector<8x32xf32>,
    return
  }
  func.func @transform_0(%arg0: i32) -> (i32, i32) {
    %c0_i32 = arith.constant 0 : i32
    %c0_i32_0 = arith.constant 0 : i32
    return %arg0, %c0_i32 : i32, i32
  }
  func.func @transform_1(%arg0: i32) -> (i32, i32) {
    %c0_i32 = arith.constant 0 : i32
    %c0_i32_0 = arith.constant 0 : i32
    %c0_i32_1 = arith.constant 0 : i32
    return %c0_i32, %c0_i32_0 : i32, i32
  }
  func.func @transform_2(%arg0: i32) -> (i32, i32) {
    %c0_i32 = arith.constant 0 : i32
    %c0_i32_0 = arith.constant 0 : i32
    return %arg0, %c0_i32 : i32, i32
  }
}

</mosaic_0001>

<bundles_post_ra>
// kernel: tpu_custom_call.1
= control target key start
LH: loop header
LB: loop body
LE: loop exit
PB: predicated region body
PF: predicated region fallthrough
CT: control target
= control target key end

     0   :  { %7 = vsyncpa [#allocation3], 0  ;;  %s254_s0 = inlined_call_operand.vmem [shape: s32[8,1], index: 0, kind: input, shape index: {}]   ;;  %s255_s1 = inlined_call_operand.hbm [shape: f32[16,32], index: 1, kind: input, shape index: {}]   ;;  %s256_s2 = inlined_call_operand.hbm [shape: f32[8,32], index: 2, kind: output, shape index: {}]  }
   0x1   :  { %8 = vsyncpa [#allocation4], 0  ;;  %s204_s9 = smov [#allocation2]   ;;  %s156_s13 = scalar_lea.hbm %s255_s1, 256 }
   0x2   :  { %s16_s10 = sshll.u32 %s204_s9, 4  ;;  %p157_p0 = scmp.ne.s32.totalorder %s255_s1, %s156_s13  ;;  %s17_s10 = int_to_ptr.vmem [resolvable:$true] %s16_s10 }
   0x3   :  { %p160_p1 = scmp.lt.u32.totalorder %s156_s13, %s255_s1 }
   0x5   :  { %p162_p2 = pnand %p160_p1, %p157_p0 }
   0x7   :  { %165 = shalt.err (!%p162_p2)
}
   0x8   :  { %s166_s18 = scalar_lea.vmem %s17_s10, 256  ;;  %p171_p4 = scmp.lt.s32.totalorder %s17_s10, %s17_s10 }
   0x9   :  { %p167_p3 = scmp.ne.s32.totalorder %s17_s10, %s166_s18  ;;  %p172_p5 = scmp.lt.s32.totalorder %s166_s18, %s166_s18 }
   0xb   :  { %p173_p6 = por %p172_p5, %p171_p4 }
   0xd   :  { %p174_p7 = pnand %p173_p6, %p167_p3 }
   0xf   :  { %177 = shalt.err (!%p174_p7)
}
  0x10   :  { %s205_s19 = smov 128   ;;  %s206_s20 = smov 8  }
  0x11   :  { %22 = dma.hbm_to_vmem [thread:$0]  %s255_s1, 256, %s17_s10, [#allocation3], %s205_s19, %s205_s19, %s206_s20  }
  0x12   :  { %200 = dma.done.wait [#allocation3], 256  }
  0x13   :  { %201 = vsyncadd [#allocation3], 4294967040  ;;  %v207_v0 = vmov 0   ;;  %v208_v1 = vmov 0.0|0.0   ;;  %v26_v2 = vld [vmem:[%s254_s0] sm:$0xff]  ;;  %v40_v4 = vld [vmem:[#allocation2 + $0x8] sm:$0xff]  ;;  %v31_v9 = vlaneseq }
  0x14   :  { %155 = vset.pattern.permute.xlu0 %v207_v0  ;;  %144 = vmatprep.subr.bf16.mxu0 %v208_v1  ;;  %v39_v3 = vld [vmem:[#allocation2] sm:$0xff]  ;;  %vm27_vm0 = vcmp.gt.s32.totalorder %v26_v2, 0  ;;  %vm209_vm2 = vmmov 0   ;;  %v210_v8 = vmov 0.0   ;;  %vm41_vm3 = vcmask 130048   ;;  %s211_s0 = smov [#allocation5]  }
  0x15   :  { %v145_v5 = vpack.c.bf16 %v40_v4, %v39_v3  ;;  %v28_v6 = vsel %vm27_vm0, %v26_v2, 0  ;;  %141 = vmatprep.mubr.msk.f32.mxu0 %vm209_vm2, %v210_v8  ;;  %v32_v10 = vand.u32 127, %v31_v9  ;;  %s123_s1 = sshll.u32 %s211_s0, 4  ;;  %vm115_vm5 = vcmask 261120   ;;  %s124_s1 = int_to_ptr.vmem [resolvable:$true] %s123_s1 }
  0x16   :  { %vm29_vm1 = vcmp.lt.s32.totalorder %v28_v6, 15  ;;  %s178_s25 = scalar_lea.vmem %s124_s1, 128  ;;  %p183_p9 = scmp.lt.s32.totalorder %s124_s1, %s124_s1 }
  0x17   :  { %146 = vmatpush3.bf16.msra.mxu0 %v145_v5  ;;  %v30_v7 = vsel %vm29_vm1, %v28_v6, 15  ;;  %p179_p8 = scmp.ne.s32.totalorder %s124_s1, %s178_s25  ;;  %p184_p10 = scmp.lt.s32.totalorder %s178_s25, %s178_s25 }
  0x18   :  { %34 = vperm.xlu0 %155, %v30_v7  }
  0x19   :  { %p185_p11 = por %p184_p10, %p183_p9 }
  0x1b   :  { %p186_p12 = pnand %p185_p11, %p179_p8 }
  0x97   :  { %v35_v11 = vpop.permute.xlu0 %34 }
  0x98   :  { %vm36_vm4 = vcmp.eq.s32.totalorder %v32_v10, %v35_v11 }
  0x99   :  { %v132_v12 = vsel %vm36_vm4, 1.0, %v210_v8 }
  0x9a   :  { %142 = vmatmul.mubr.msk.f32.vlgmr.msra.gmra.mrb[0].mxu0 %vm41_vm3, %v132_v12 }
 0x16d   :  { %v111_v13 = vpop.f32.mrb[0].mxu0 }
 0x16e   :  { %v143_v14 = vpop.f32.mrb[1].mxu0  ;;  %116 = vst.msk [vmem:[#allocation5] sm:$0xff] %vm115_vm5, %v111_v13 }
 0x16f   :  { %189 = shalt.err (!%p186_p12)
}
 0x170   :  { %s190_s28 = scalar_lea.hbm %s256_s2, 128 }
 0x171   :  { %p191_p13 = scmp.ne.s32.totalorder %s256_s2, %s190_s28  ;;  %p194_p0 = scmp.lt.u32.totalorder %s190_s28, %s256_s2 }
 0x173   :  { %p196_p1 = pnand %p194_p0, %p191_p13 }
 0x175   :  { %199 = shalt.err (!%p196_p1)
}
 0x176   :  { %126 = dma.vmem_to_hbm [thread:$0]  %s124_s1, 128, %s256_s2, [#allocation4]  }
 0x177   :  { %202 = dma.done.wait [#allocation4], 128  }
 0x178   :  { %203 = vsyncadd [#allocation4], 4294967168 }
 0x179   :  { %130 = vsyncpa [#allocation3], 1 }
 0x17a   :  { %131 = vsyncpa [#allocation4], 1 }

</bundles_post_ra>
